<compile_context>
chip_gen: v6e
topology: v6e:2x2x1
jax: 0.10.0
libtpu: 0.0.40
codegen_flags: <defaults>
</compile_context>

<pallas_src>
import functools

import jax
import jax.numpy as jnp
import numpy as np
from jax.experimental import pallas as pl
from jax.experimental.pallas import tpu as pltpu

_VMEM_LIMIT = 32 * 1024 * 1024  # fits v5e/v6e (128 MiB) and v7x (64 MiB physical)


def _round_up(x, m):
    return (x + m - 1) // m * m


# ----------------------------- kernel helpers --------------------------------

def _tile_logits(idx, emb_ref):
    """One-hot @ table on the MXU: (tile, 1) int32 idx -> (tile, Vp) f32 logits."""
    vp = emb_ref.shape[1]
    iota = jax.lax.broadcasted_iota(jnp.int32, (idx.shape[0], vp), 1)
    onehot = (iota == idx).astype(jnp.float32)
    logits = jnp.dot(onehot, emb_ref[...],
                     preferred_element_type=jnp.float32,
                     precision=jax.lax.Precision.HIGHEST)  # exact row selection
    return logits, iota


def _tile_loss_psum(logits, iota, tgt, v_true):
    """Per-tile sum of NLL.

    Column `v_true` of `logits` already holds logsumexp(emb[idx]) (baked into
    the padded table by the wrapper), so
        nll_row = logits[row, v_true] - logits[row, tgt]
    with no exp/log/max in-kernel.  Padded tail rows were given idx == v_true
    (an all-zero table row), so their logits row is 0 and they contribute
    exactly 0 to the sum.
    """
    pick = ((iota == v_true).astype(jnp.float32)
            - (iota == tgt).astype(jnp.float32))
    return jnp.sum(logits * pick)


# ----------------------------- kernel bodies ---------------------------------

def _logits_kernel(idx_ref, emb_ref, logits_ref):
    logits, _ = _tile_logits(idx_ref[...], emb_ref)
    logits_ref[...] = logits


def _loss_only_kernel(tok_ref, emb_ref, psum_ref, *, v_true):
    idx = tok_ref[:, 0:1]                      # (tile, 1)
    tgt = tok_ref[:, 1:2]                      # (tile, 1)
    logits, iota = _tile_logits(idx, emb_ref)
    psum = _tile_loss_psum(logits, iota, tgt, v_true)
    psum_ref[...] = jnp.full(psum_ref.shape, psum, dtype=jnp.float32)


def _logits_loss_kernel(tok_ref, emb_ref, logits_ref, psum_ref, *, v_true):
    idx = tok_ref[:, 0:1]
    tgt = tok_ref[:, 1:2]
    logits, iota = _tile_logits(idx, emb_ref)
    logits_ref[...] = logits
    psum = _tile_loss_psum(logits, iota, tgt, v_true)
    psum_ref[...] = jnp.full(psum_ref.shape, psum, dtype=jnp.float32)


# ------------------------------- wrapper --------------------------------------

def _choose_tile(bt):
    if bt >= 4096:
        return 2048  # amortizes ~0.35us/step overhead; still >= 2 steps for v7x
    # Small problems: aim for 2 grid steps so both v7x TensorCores are fed.
    return max(8, _round_up(pl.cdiv(bt, 2), 8))


def _prepare_table(emb_table):
    """Pad (V, V) -> (Vp, Vp) f32 and bake logsumexp(emb, axis=1) into column V.

    Vp = round_up(V + 1, 128) guarantees one spare lane-dense column for the
    lse and one spare (all-zero) row for the padding sentinel idx == V.
    """
    v = emb_table.shape[0]
    vp = _round_up(v + 1, 128)
    emb = emb_table.astype(jnp.float32)
    emb_p = jnp.zeros((vp, vp), jnp.float32)
    emb_p = emb_p.at[:v, :v].set(emb)
    emb_p = emb_p.at[:v, v].set(jax.nn.logsumexp(emb, axis=1))
    return emb_p, vp


def bigram_forward(emb_table, idx, targets=None, *, materialize_logits=True):
    """JAX/Pallas equivalent of BigramModel.forward(idx, targets).

      * targets is None                    -> ((B, T, V) logits, None)
      * targets given                      -> ((B*T, V) logits, scalar loss)
      * materialize_logits=False + targets -> (None, scalar loss)  [no logits HBM store]
    """
    B, T = idx.shape
    V = emb_table.shape[0]
    BT = B * T
    tile = _choose_tile(BT)
    bt_pad = _round_up(BT, tile)
    n_tiles = bt_pad // tile

    emb_p, Vp = _prepare_table(emb_table)

    # VMEM guard (review: v7x has only 64 MiB physical / 32 MiB scoped default):
    # resident table + double-buffered logits / token tiles + psum block.
    est = 2 * Vp * Vp * 4 + 2 * tile * Vp * 4 + 2 * tile * 128 * 4 + 2 * 8 * 128 * 4
    if est > _VMEM_LIMIT:
        raise ValueError(
            f"vocab {V} with tile {tile} needs ~{est >> 20} MiB VMEM "
            f"(> {_VMEM_LIMIT >> 20} MiB); add a K-tiled grid axis over the "
            "embedding table or store it in bf16.")

    cp = pltpu.CompilerParams(
        dimension_semantics=("parallel",),      # B*T axis shards across TCs
        vmem_limit_bytes=_VMEM_LIMIT,
    )
    emb_spec = pl.BlockSpec((Vp, Vp), lambda i: (0, 0))         # VMEM-resident table
    logits_spec = pl.BlockSpec((tile, Vp), lambda i: (i, 0))    # lane-dense logits
    psum_spec = pl.BlockSpec((8, 128), lambda i: (i, 0))        # lane-dense partial sums
    psum_shape = jax.ShapeDtypeStruct((8 * n_tiles, 128), jnp.float32)

    if targets is None:
        idx_p = jnp.full((bt_pad, 1), V, jnp.int32).at[:BT, 0].set(
            idx.reshape(BT).astype(jnp.int32))
        logits_p = pl.pallas_call(
            _logits_kernel,
            out_shape=jax.ShapeDtypeStruct((bt_pad, Vp), jnp.float32),
            grid=(n_tiles,),
            in_specs=[pl.BlockSpec((tile, 1), lambda i: (i, 0)), emb_spec],
            out_specs=logits_spec,
            compiler_params=cp,
        )(idx_p, emb_p)
        # Shape-parity slice; consume the padded buffer directly where possible.
        return logits_p[:BT, :V].reshape(B, T, V), None

    # Merge idx + targets into one (bt_pad, 2) int32 block (single DMA stream).
    # Padded tail rows get the sentinel idx == V -> all-zero table row -> 0 NLL.
    tok_p = jnp.full((bt_pad, 2), V, jnp.int32)
    tok_p = tok_p.at[:BT, 0].set(idx.reshape(BT).astype(jnp.int32))
    tok_p = tok_p.at[:BT, 1].set(targets.reshape(BT).astype(jnp.int32))
    tok_spec = pl.BlockSpec((tile, 2), lambda i: (i, 0))

    if materialize_logits:
        logits_p, psum = pl.pallas_call(
            functools.partial(_logits_loss_kernel, v_true=V),
            out_shape=(jax.ShapeDtypeStruct((bt_pad, Vp), jnp.float32), psum_shape),
            grid=(n_tiles,),
            in_specs=[tok_spec, emb_spec],
            out_specs=(logits_spec, psum_spec),
            compiler_params=cp,
        )(tok_p, emb_p)
        loss = jnp.sum(psum[::8, 0]) / jnp.float32(BT)
        return logits_p[:BT, :V], loss

    psum = pl.pallas_call(
        functools.partial(_loss_only_kernel, v_true=V),
        out_shape=psum_shape,
        grid=(n_tiles,),
        in_specs=[tok_spec, emb_spec],
        out_specs=psum_spec,
        compiler_params=cp,
    )(tok_p, emb_p)
    loss = jnp.sum(psum[::8, 0]) / jnp.float32(BT)
    return None, loss


# ------------------------------ self-test -------------------------------------

def _reference_forward(emb_table, idx, targets):
    logits = emb_table[idx]                                    # (B, T, V)
    B, T, V = logits.shape
    lf = logits.reshape(B * T, V)
    tf = targets.reshape(B * T)
    logp = jax.nn.log_softmax(lf, axis=-1)
    loss = -jnp.mean(logp[jnp.arange(B * T), tf])
    return lf, loss


if __name__ == "__main__":
    vocab_size = 65   # e.g. tiny-Shakespeare char vocab
    B, T = 2, 8

    key = jax.random.PRNGKey(0)
    k_emb, k_idx, k_tgt = jax.random.split(key, 3)
    emb_table = jax.random.normal(k_emb, (vocab_size, vocab_size), dtype=jnp.float32)
    idx = jax.random.randint(k_idx, (B, T), 0, vocab_size, dtype=jnp.int32)
    targets = jax.random.randint(k_tgt, (B, T), 0, vocab_size, dtype=jnp.int32)

    # jit the whole forward so table padding / lse prep fuse with the kernel.
    fwd_full = jax.jit(bigram_forward)
    fwd_logits = jax.jit(lambda e, i: bigram_forward(e, i, None)[0])
    fwd_loss_only = jax.jit(
        lambda e, i, t: bigram_forward(e, i, t, materialize_logits=False)[1])

    # full forward (logits + loss), matching PyTorch semantics
    logits, loss = fwd_full(emb_table, idx, targets)
    logits = jax.block_until_ready(logits)
    loss = jax.block_until_ready(loss)

    # targets=None path (returns (B, T, V) logits)
    logits_nl = jax.block_until_ready(fwd_logits(emb_table, idx))
    assert logits_nl.shape == (B, T, vocab_size)

    # loss-only path (skips the logits HBM writeback entirely)
    loss_only = jax.block_until_ready(fwd_loss_only(emb_table, idx, targets))

    ref_logits, ref_loss = _reference_forward(emb_table, idx, targets)
    assert logits.shape == (B * T, vocab_size)
    assert np.allclose(np.asarray(logits), np.asarray(ref_logits), atol=1e-5)
    assert np.allclose(np.asarray(logits_nl).reshape(B * T, vocab_size),
                       np.asarray(ref_logits), atol=1e-5)
    assert np.allclose(float(loss), float(ref_loss), atol=1e-5)
    assert np.allclose(float(loss_only), float(ref_loss), atol=1e-5)

    print("KERNEL_OK")
</pallas_src>

<mosaic_0001>
module attributes {stable_mosaic.version = 11 : i64} {
  func.func @_logits_loss_kernel(%arg0: i32, %arg1: memref<8x2xi32, #tpu.memory_space<vmem>>, %arg2: memref<128x128xf32, #tpu.memory_space<vmem>>, %arg3: memref<8x128xf32, #tpu.memory_space<vmem>>, %arg4: memref<8x128xf32, #tpu.memory_space<vmem>>) attributes {dimension_semantics = [#tpu.dimension_semantics<parallel>], iteration_bounds = array<i64: 2>, scalar_prefetch = 0 : i64, scratch_operands = 0 : i64, tpu.core_type = #tpu.core_type<tc>, window_params = [{transform_indices = @transform_0, window_bounds = array<i64: 8, 2>}, {pipeline_mode = #tpu.pipeline_mode<synchronous>, transform_indices = @transform_1, window_bounds = array<i64: 128, 128>}, {transform_indices = @transform_2, window_bounds = array<i64: 8, 128>}, {transform_indices = @transform_3, window_bounds = array<i64: 8, 128>}]} {
    %c0 = arith.constant 0 : index
    %c0_0 = arith.constant 0 : index
    %0 = vector.load %arg1[%c0, %c0_0] : memref<8x2xi32, #tpu.memory_space<vmem>>, vector<8x1xi32>
    %c0_1 = arith.constant 0 : index
    %c1 = arith.constant 1 : index
    %1 = vector.load %arg1[%c0_1, %c1] : memref<8x2xi32, #tpu.memory_space<vmem>>, vector<8x1xi32>
    %2 = tpu.iota {dimensions = array<i32: 1>} : vector<8x128xi32>
    %3 = vector.broadcast %0 : vector<8x1xi32> to vector<8x128xi32>
    %4 = arith.cmpi eq, %2, %3 : vector<8x128xi32>
    %5 = arith.extui %4 : vector<8x128xi1> to vector<8x128xi32>
    %6 = arith.sitofp %5 : vector<8x128xi32> to vector<8x128xf32>
    %c0_2 = arith.constant 0 : index
    %c0_3 = arith.constant 0 : index
    %7 = vector.load %arg2[%c0_2, %c0_3] : memref<128x128xf32, #tpu.memory_space<vmem>>, vector<128x128xf32>
    %cst = arith.constant dense<0.000000e+00> : vector<8x128xf32>
    %8 = tpu.matmul %6, %7, %cst {dimension_numbers = #tpu.dot_dimension_numbers<[1], [0], [0], [1], [0, 0, 1, 1], [], []>, precision = #tpu.contract_precision<fp32>} : vector<8x128xf32>, vector<128x128xf32>, vector<8x128xf32> -> vector<8x128xf32>
    %c0_4 = arith.constant 0 : index
    %c0_5 = arith.constant 0 : index
    %9 = vector.load %arg3[%c0_4, %c0_5] : memref<8x128xf32, #tpu.memory_space<vmem>>, vector<8x128xf32>
    tpu.vector_store %arg3[%c0_4, %c0_5], %8 {strides = array<i32>} : memref<8x128xf32, #tpu.memory_space<vmem>>, vector<8x128xf32>,
    %c65_i32 = arith.constant 65 : i32
    %10 = vector.broadcast %c65_i32 : i32 to vector<8x128xi32>
    %11 = arith.cmpi eq, %2, %10 : vector<8x128xi32>
    %12 = arith.extui %11 : vector<8x128xi1> to vector<8x128xi32>
    %13 = arith.sitofp %12 : vector<8x128xi32> to vector<8x128xf32>
    %14 = vector.broadcast %1 : vector<8x1xi32> to vector<8x128xi32>
    %15 = arith.cmpi eq, %2, %14 : vector<8x128xi32>
    %16 = arith.extui %15 : vector<8x128xi1> to vector<8x128xi32>
    %17 = arith.sitofp %16 : vector<8x128xi32> to vector<8x128xf32>
    %18 = arith.subf %13, %17 : vector<8x128xf32>
    %19 = arith.mulf %8, %18 : vector<8x128xf32>
    %20 = vector.shape_cast %19 : vector<8x128xf32> to vector<1x8x128xf32>
    %cst_6 = arith.constant dense<0.000000e+00> : vector<1xf32>
    %21 = vector.multi_reduction <add>, %20, %cst_6 [1, 2] : vector<1x8x128xf32> to vector<1xf32>
    %22 = vector.shape_cast %21 : vector<1xf32> to vector<1x1x1xf32>
    %23 = vector.extract %22[0, 0, 0] : f32 from vector<1x1x1xf32>
    %24 = vector.broadcast %23 : f32 to vector<8x128xf32>
    %c0_7 = arith.constant 0 : index
    %c0_8 = arith.constant 0 : index
    %25 = vector.load %arg4[%c0_7, %c0_8] : memref<8x128xf32, #tpu.memory_space<vmem>>, vector<8x128xf32>
    tpu.vector_store %arg4[%c0_7, %c0_8], %24 {strides = array<i32>} : memref<8x128xf32, #tpu.memory_space<vmem>>, vector<8x128xf32>,
    return
  }
  func.func @transform_0(%arg0: i32) -> (i32, i32) {
    %c0_i32 = arith.constant 0 : i32
    %c0_i32_0 = arith.constant 0 : i32
    return %arg0, %c0_i32 : i32, i32
  }
  func.func @transform_1(%arg0: i32) -> (i32, i32) {
    %c0_i32 = arith.constant 0 : i32
    %c0_i32_0 = arith.constant 0 : i32
    %c0_i32_1 = arith.constant 0 : i32
    return %c0_i32, %c0_i32_0 : i32, i32
  }
  func.func @transform_2(%arg0: i32) -> (i32, i32) {
    %c0_i32 = arith.constant 0 : i32
    %c0_i32_0 = arith.constant 0 : i32
    return %arg0, %c0_i32 : i32, i32
  }
  func.func @transform_3(%arg0: i32) -> (i32, i32) {
    %c0_i32 = arith.constant 0 : i32
    %c0_i32_0 = arith.constant 0 : i32
    return %arg0, %c0_i32 : i32, i32
  }
}

</mosaic_0001>

<bundles_post_ra>
// kernel: bigram_forward.1
= control target key start
LH: loop header
LB: loop body
LE: loop exit
PB: predicated region body
PF: predicated region fallthrough
CT: control target
= control target key end

     0   :  { %9 = vsyncpa [#allocation3], 0  ;;  %s1965_s0 = inlined_call_operand.vmem [shape: s32[16,2], index: 0, kind: input, shape index: {}]   ;;  %s1966_s1 = inlined_call_operand.vmem [shape: f32[128,128], index: 1, kind: input, shape index: {}]   ;;  %s1967_s2 = inlined_call_operand.hbm [shape: f32[16,128], index: 2, kind: output, shape index: {0}]   ;;  %s1968_s3 = inlined_call_operand.vmem [shape: f32[16,128], index: 3, kind: output, shape index: {1}]  }
   0x1   :  { %11 = vsyncpa [#allocation3 + $0x1], 0  ;;  %s1435_s12 = smov 0   ;;  %s1437_s13 = smov 0  }
   0x2   :  { %s1439_s14 = smov 0   ;;  %s1441_s15 = smov 0  }
   0x3 LB: > { %s1456_s16 = sadd.s32 4294967295, %s1407_s15   ;;  %s970_s17 = sadd.s32 4294967294, %s1407_s15   ;;  %s1407_s15 = sphi %s1441_s15, %s1974_s15   ;;  %s1403_s14 = sphi %s1439_s14, %s1973_s14   ;;  %s1399_s13 = sphi %s1437_s13, %s1972_s13   ;;  %s1395_s12 = sphi %s1435_s12, %s1971_s12  }
   0x4   : > { %s1460_s18 = sadd.s32 1, %s1407_s15   ;;  %s71_s19 = sadd.s32 1, %s1403_s14 }
   0x5   : > { %s68_s20 = ssub.s32 %s1407_s15, %s1460_s18  ;;  %p81_p0 = scmp.ne.s32.totalorder %s1403_s14, %s1399_s13 }
   0x6   : > { %p69_p1 = scmp.eq.s32.totalorder %s68_s20, 0  ;;  %p82_p2 = scmp.eq.s32.totalorder %s1456_s16, 1 }
   0x7   : > { %p87_p3 = scmp.ne.s32.totalorder %s1399_s13, %s1395_s12  ;;  %p88_p4 = scmp.eq.s32.totalorder %s970_s17, 1 }
   0x8   : > { %s1471_s21 = scalar_select %p69_p1, %s1403_s14, %s71_s19  }
   0x9   : > { %p1473_p5 = por %p82_p2, %p81_p0  ;;  %p1477_p6 = por %p88_p4, %p87_p3 }
   0xa   : > { %p973_p7 = scmp.ge.s32.totalorder %s1407_s15, 1  ;;  %p142_p8 = scmp.lt.s32.totalorder %s1407_s15, 3 }
   0xc   : > { %p143_p9 = pnand %p973_p7, %p142_p8 }
   0xd   : > { %p169_p10 = scmp.lt.s32.totalorder (!%p143_p9), %s1456_s16, 1  ;;  %s160_s27 = sand.u32 (!%p143_p9), 1, %s1399_s13  }
   0xe   : > { %146 = sbr.rel (%p143_p9) target bundleno = 625 (0x271), region = 28  ;;  %s974_s28 = sshll.u32 (!%p143_p9), %s160_s27, 3 }
   0xf   : > { %s162_s29 = scalar_lea.vmem (!%p143_p9), [#allocation2], %s974_s28  ;;  %s984_s30 = sshll.u32 (!%p143_p9), %s1456_s16, 7 }
  0x10   : > { %s884_s4 = sshll.u32 (!%p143_p9), %s162_s29, 4  ;;  %s882_s7 = scalar_lea.hbm (!%p143_p9), %s1967_s2, %s984_s30  ;;  %s885_s4 = int_to_ptr.vmem [resolvable:$true] %s884_s4 }
  0x11   : > { %s867_s8 = scalar_lea.sflag (!%p143_p9), [#allocation3], %s160_s27  ;;  %s1347_s10 = scalar_lea.vmem (!%p143_p9), %s885_s4, 128 }
  0x12   : > { %p1348_p11 = scmp.ne.s32.totalorder (!%p143_p9), %s885_s4, %s1347_s10  ;;  %s1414_s11 = smov (!%p143_p9), [#allocation2]  }
  0x13   : > { %v201_v0 = vld [vmem:[%s1966_s1 + $0x78] sm:$0xff]  ;;  %v200_v1 = vld [vmem:[%s1966_s1 + $0x70] sm:$0xff]  ;;  %v199_v2 = vld [vmem:[%s1966_s1 + $0x68] sm:$0xff]  ;;  %v1409_v3 = vmov 0   ;;  %v1410_v4 = vmov 0.0   ;;  %s1512_s9 = scalar_select %p169_p10, %s1456_s16, 1 }
  0x14   : > { %1345 = vset.pattern.permute.xlu0 %v1409_v3  ;;  %1124 = vmatprep.subr.mxu1 %v1410_v4  ;;  %v1494_v5 = vand.u32 4294901760, %v201_v0  ;;  %v1496_v6 = vand.u32 4294901760, %v200_v1  ;;  %v1498_v7 = vand.u32 4294901760, %v199_v2  ;;  %v198_v8 = vld [vmem:[%s1966_s1 + $0x60] sm:$0xff]  ;;  %v197_v9 = vld [vmem:[%s1966_s1 + $0x58] sm:$0xff]  ;;  %v196_v10 = vld [vmem:[%s1966_s1 + $0x50] sm:$0xff]  ;;  %p1349_p12 = pnand %p1348_p11, %p1473_p5 }
  0x15   : > { %v1514_v11 = vand.u32 4294901760, %v198_v8  ;;  %1089 = vmatprep.subr.mxu0 %v1410_v4  ;;  %v1517_v12 = vand.u32 4294901760, %v197_v9  ;;  %v1519_v13 = vand.u32 4294901760, %v196_v10  ;;  %v195_v14 = vld [vmem:[%s1966_s1 + $0x48] sm:$0xff]  ;;  %v194_v15 = vld [vmem:[%s1966_s1 + $0x40] sm:$0xff]  ;;  %s975_s20 = sshll.u32 %s1512_s9, 3 }
  0x16   : > { %v1528_v16 = vsub.f32 %v201_v0, %v1494_v5  ;;  %v1531_v17 = vsub.f32 %v200_v1, %v1496_v6  ;;  %v1534_v18 = vsub.f32 %v199_v2, %v1498_v7  ;;  %1090 = vmatpush3.msra.mxu0 %v1494_v5  ;;  %v1537_v19 = vand.u32 4294901760, %v195_v14  ;;  %s172_s26 = scalar_lea.vmem %s1965_s0, %s975_s20  ;;  %v193_v36 = vld [vmem:[%s1966_s1 + $0x38] sm:$0xff]  ;;  %v192_v37 = vld [vmem:[%s1966_s1 + $0x30] sm:$0xff]  ;;  %v191_v38 = vld [vmem:[%s1966_s1 + $0x28] sm:$0xff]  ;;  %p1350_p13 = pneg %p1349_p12 }
  0x17   : > { %v1541_v20 = vsub.f32 %v198_v8, %v1514_v11  ;;  %v1544_v21 = vsub.f32 %v197_v9, %v1517_v12  ;;  %1091 = vmatprep.subr.mxu0 %v1410_v4  ;;  %v1548_v22 = vsub.f32 %v196_v10, %v1519_v13  ;;  %v1550_v23 = vand.u32 4294901760, %v194_v15  ;;  %v1561_v27 = vld [vmem:[%s172_s26] sm:$0xff]  ;;  %v189_v51 = vld [vmem:[%s1966_s1 + $0x18] sm:$0xff]  ;;  %v188_v57 = vld [vmem:[%s1966_s1 + $0x10] sm:$0xff]  ;;  %s1351_s17 = sshll.u32 %s1414_s11, 4  ;;  %s1352_s17 = int_to_ptr.vmem [resolvable:$false] %s1351_s17 }
  0x18   : > { %v296_v24 = vand.u32 4294901760, %v1528_v16  ;;  %v303_v25 = vand.u32 4294901760, %v1531_v17  ;;  %v310_v26 = vand.u32 4294901760, %v1534_v18  ;;  %1092 = vmatpush3.msra.mxu0 %v1496_v6  ;;  %v1567_v30 = vsub.f32 %v195_v14, %v1537_v19  ;;  %181 = vperm.xlu0 %1345, %v1561_v27   ;;  %v190_v44 = vld [vmem:[%s1966_s1 + $0x20] sm:$0xff]  ;;  %v187_v62 = vld [vmem:[%s1966_s1 + $0x8] sm:$0xff]  ;;  %s1353_s19 = scalar_lea.vmem %s1352_s17, 256  ;;  %p1354_p0 = scmp.lt.s32.totalorder %s885_s4, %s1352_s17 }
  0x19   : > { %v317_v28 = vand.u32 4294901760, %v1541_v20  ;;  %v324_v29 = vand.u32 4294901760, %v1544_v21  ;;  %1093 = vmatprep.subr.mxu0 %v1410_v4  ;;  %v331_v34 = vand.u32 4294901760, %v1548_v22  ;;  %v1583_v35 = vsub.f32 %v194_v15, %v1550_v23  ;;  %v186_v9 = vld [vmem:[%s1966_s1] sm:$0xff]  ;;  %p1355_p1 = scmp.lt.s32.totalorder %s1353_s19, %s1347_s10 }
  0x1a   : > { %v297_v31 = vsub.f32 %v1528_v16, %v296_v24  ;;  %v304_v32 = vsub.f32 %v1531_v17, %v303_v25  ;;  %v311_v33 = vsub.f32 %v1534_v18, %v310_v26  ;;  %1094 = vmatpush3.msra.mxu0 %v1498_v7  ;;  %v338_v43 = vand.u32 4294901760, %v1567_v30 }
  0x1b   : > { %1095 = vmatprep.subr.mxu0 %v1410_v4  ;;  %v318_v41 = vsub.f32 %v1541_v20, %v317_v28  ;;  %v325_v42 = vsub.f32 %v1544_v21, %v324_v29  ;;  %v1606_v46 = vand.u32 4294901760, %v193_v36  ;;  %v1609_v47 = vand.u32 4294901760, %v192_v37  ;;  %p1356_p2 = por %p1355_p1, %p1354_p0 }
  0x1c   : > { %v298_v39 = vand.u32 4294901760, %v297_v31  ;;  %v305_v40 = vand.u32 4294901760, %v304_v32  ;;  %1096 = vmatpush3.msra.mxu0 %v1514_v11  ;;  %v312_v45 = vand.u32 4294901760, %v311_v33  ;;  %v1611_v48 = vand.u32 4294901760, %v191_v38 }
  0x1d   : > { %1097 = vmatprep.subr.mxu0 %v1410_v4  ;;  %v332_v49 = vsub.f32 %v1548_v22, %v331_v34  ;;  %v345_v50 = vand.u32 4294901760, %v1583_v35  ;;  %v319_v52 = vand.u32 4294901760, %v318_v41  ;;  %v1623_v53 = vsub.f32 %v193_v36, %v1606_v46  ;;  %p1357_p3 = pnand %p1356_p2, %p1350_p13 }
  0x1e   : > { %1125 = vmatpush3.msra.mxu1 %v298_v39  ;;  %1098 = vmatpush3.msra.mxu0 %v1517_v12  ;;  %v1626_v54 = vsub.f32 %v192_v37, %v1609_v47  ;;  %v1629_v55 = vand.u32 4294901760, %v190_v44  ;;  %v339_v56 = vsub.f32 %v1567_v30, %v338_v43  ;;  %v326_v58 = vand.u32 4294901760, %v325_v42 }
  0x1f   : > { %1126 = vmatprep.subr.mxu1 %v1410_v4  ;;  %1099 = vmatprep.subr.mxu0 %v1410_v4  ;;  %v352_v59 = vand.u32 4294901760, %v1623_v53  ;;  %v1641_v60 = vsub.f32 %v191_v38, %v1611_v48  ;;  %v1644_v61 = vand.u32 4294901760, %v189_v51  ;;  %v346_v63 = vsub.f32 %v1583_v35, %v345_v50 }
  0x20   : > { %1127 = vmatpush3.msra.mxu1 %v305_v40  ;;  %1100 = vmatpush3.msra.mxu0 %v1519_v13  ;;  %v333_v0 = vand.u32 4294901760, %v332_v49  ;;  %v359_v1 = vand.u32 4294901760, %v1626_v54  ;;  %v1656_v2 = vsub.f32 %v190_v44, %v1629_v55  ;;  %v1659_v3 = vand.u32 4294901760, %v188_v57 }
  0x21   : > { %1128 = vmatprep.subr.mxu1 %v1410_v4  ;;  %1101 = vmatprep.subr.mxu0 %v1410_v4  ;;  %v1663_v8 = vand.u32 4294901760, %v187_v62  ;;  %v340_v10 = vand.u32 4294901760, %v339_v56  ;;  %v353_v14 = vsub.f32 %v1623_v53, %v352_v59  ;;  %v366_v15 = vand.u32 4294901760, %v1641_v60 }
  0x22   : > { %1129 = vmatpush3.msra.mxu1 %v312_v45  ;;  %1102 = vmatpush3.msra.mxu0 %v1537_v19  ;;  %v1673_v31 = vsub.f32 %v189_v51, %v1644_v61  ;;  %v347_v32 = vand.u32 4294901760, %v346_v63  ;;  %v360_v33 = vsub.f32 %v1626_v54, %v359_v1  ;;  %v373_v36 = vand.u32 4294901760, %v1656_v2 }
  0x23   : > { %1130 = vmatprep.subr.mxu1 %v1410_v4  ;;  %1103 = vmatprep.subr.mxu0 %v1410_v4  ;;  %v1683_v37 = vsub.f32 %v188_v57, %v1659_v3  ;;  %v1686_v38 = vand.u32 4294901760, %v186_v9  ;;  %v1691_v39 = vsub.f32 %v187_v62, %v1663_v8  ;;  %v354_v40 = vand.u32 4294901760, %v353_v14 }
  0x24   : > { %1131 = vmatpush3.msra.mxu1 %v319_v52  ;;  %1104 = vmatpush3.msra.mxu0 %v1550_v23  ;;  %v367_v41 = vsub.f32 %v1641_v60, %v366_v15  ;;  %v380_v42 = vand.u32 4294901760, %v1673_v31  ;;  %v361_v44 = vand.u32 4294901760, %v360_v33  ;;  %v374_v45 = vsub.f32 %v1656_v2, %v373_v36 }
  0x25   : > { %1132 = vmatprep.subr.mxu1 %v1410_v4  ;;  %1105 = vmatprep.subr.mxu0 %v1410_v4  ;;  %v387_v49 = vand.u32 4294901760, %v1683_v37  ;;  %v1705_v51 = vsub.f32 %v186_v9, %v1686_v38  ;;  %vm1411_vm0 = vmmov 0   ;;  %v394_v57 = vand.u32 4294901760, %v1691_v39 }
  0x26   : > { %1133 = vmatpush3.msra.mxu1 %v326_v58  ;;  %1106 = vmatpush3.msra.mxu0 %v1606_v46  ;;  %v368_v52 = vand.u32 4294901760, %v367_v41  ;;  %v381_v56 = vsub.f32 %v1673_v31, %v380_v42  ;;  %v375_v58 = vand.u32 4294901760, %v374_v45  ;;  %v178_v41 = vlaneseq }
  0x27   : > { %1134 = vmatprep.subr.mxu1 %v1410_v4  ;;  %1107 = vmatprep.subr.mxu0 %v1410_v4  ;;  %v388_v62 = vsub.f32 %v1683_v37, %v387_v49  ;;  %v401_v63 = vand.u32 4294901760, %v1705_v51  ;;  %v395_v9 = vsub.f32 %v1691_v39, %v394_v57 }
  0x28   : > { %1135 = vmatpush3.msra.mxu1 %v333_v0  ;;  %1108 = vmatpush3.msra.mxu0 %v1609_v47  ;;  %v382_v0 = vand.u32 4294901760, %v381_v56  ;;  %v1413_v56 = vmov 1.0  }
  0x29   : > { %1136 = vmatprep.subr.mxu1 %v1410_v4  ;;  %1109 = vmatprep.subr.mxu0 %v1410_v4  ;;  %v402_v14 = vsub.f32 %v1705_v51, %v401_v63 }
  0x2a   : > { %1137 = vmatpush3.msra.mxu1 %v340_v10  ;;  %1110 = vmatpush3.msra.mxu0 %v1611_v48  ;;  %v389_v10 = vand.u32 4294901760, %v388_v62 }
  0x2b   : > { %1138 = vmatprep.subr.mxu1 %v1410_v4  ;;  %1111 = vmatprep.subr.mxu0 %v1410_v4  ;;  %v403_v33 = vand.u32 4294901760, %v402_v14 }
  0x2c   : > { %1139 = vmatpush3.msra.mxu1 %v347_v32  ;;  %1112 = vmatpush3.msra.mxu0 %v1629_v55  ;;  %v396_v32 = vand.u32 4294901760, %v395_v9 }
  0x2d   : > { %1140 = vmatprep.subr.mxu1 %v1410_v4  ;;  %1156 = vmatprep.mubr.msk.f32.mxu1 %vm1411_vm0, %v1410_v4 }
  0x2e   : > { %1141 = vmatpush3.msra.mxu1 %v354_v40  ;;  %1113 = vmatprep.subr.mxu0 %v1410_v4  ;;  %v1412_v40 = vmov 1  }
  0x2f   : > { %1142 = vmatprep.subr.mxu1 %v1410_v4  ;;  %1114 = vmatpush3.msra.mxu0 %v1644_v61 }
  0x30   : > { %1143 = vmatpush3.msra.mxu1 %v361_v44  ;;  %1115 = vmatprep.subr.mxu0 %v1410_v4  ;;  %v1745_v44 = vand.u32 127, %v178_v41 }
  0x31   : > { %1144 = vmatprep.subr.mxu1 %v1410_v4  ;;  %1116 = vmatpush3.msra.mxu0 %v1659_v3 }
  0x32   : > { %1145 = vmatpush3.msra.mxu1 %v368_v52  ;;  %1117 = vmatprep.subr.mxu0 %v1410_v4  ;;  %vm844_vm3 = vcmp.eq.s32.totalorder %v1745_v44, 65 }
  0x33   : > { %1146 = vmatprep.subr.mxu1 %v1410_v4  ;;  %1118 = vmatpush3.msra.mxu0 %v1663_v8 }
  0x34   : > { %1147 = vmatpush3.msra.mxu1 %v375_v58  ;;  %1119 = vmatprep.subr.mxu0 %v1410_v4 }
  0x35   : > { %1148 = vmatprep.subr.mxu1 %v1410_v4  ;;  %1120 = vmatpush3.msra.mxu0 %v1686_v38 }
  0x36   : > { %1149 = vmatpush3.msra.mxu1 %v382_v0  ;;  %1121 = vmatprep.mubr.msk.f32.mxu0 %vm1411_vm0, %v1410_v4 }
  0x37   : > { %1150 = vmatprep.subr.mxu1 %v1410_v4  ;;  %1159 = vmatprep.subr.mxu0 %v1410_v4 }
  0x38   : > { %1151 = vmatpush3.msra.mxu1 %v389_v10  ;;  %1346 = vset.pattern.permute.xlu0 %v1412_v40 }
  0x39   : > { %1152 = vmatprep.subr.mxu1 %v1410_v4  ;;  %848 = vperm.xlu0 %1346, %v1561_v27  }
  0x3a   : > { %1153 = vmatpush3.msra.mxu1 %v396_v32 }
  0x3b   : > { %1154 = vmatprep.subr.mxu1 %v1410_v4 }
  0x3c   : > { %1155 = vmatpush3.msra.mxu1 %v403_v33 }
  0x3d   : > { %1194 = vmatprep.subr.mxu1 %v1410_v4 }
  0x93   : > { %v1747_v45 = vpop.permute.xlu0 %181 }
  0x94   : > { %vm183_vm1 = vcmp.eq.s32.totalorder %v1745_v44, %v1747_v45 }
  0x95   : > { %v977_v52 = vsel %vm183_vm1, 1.0, %v1410_v4  ;;  %1157 = vmatmul.mubr.msk.f32.vlgmr.msra.gmra.mxu1 %vm183_vm1, %v1413_v56 }
  0x96   : > { %v1759_v27 = vsub.f32 %v977_v52, %v977_v52  ;;  %1195 = vmatpush3.msra.mxu1 %v1494_v5  ;;  %1226 = vmatprep.mubr.msk.f32.mxu1 %vm1411_vm0, %v1410_v4 }
  0x97   : > { %1196 = vmatprep.subr.mxu1 %v1410_v4 }
  0x98   : > { %1197 = vmatpush3.msra.mxu1 %v1496_v6  ;;  %v285_v58 = vand.u32 4294901760, %v1759_v27 }
  0x99   : > { %1198 = vmatprep.subr.mxu1 %v1410_v4 }
  0x9a   : > { %1199 = vmatpush3.msra.mxu1 %v1498_v7  ;;  %v286_v62 = vsub.f32 %v1759_v27, %v285_v58 }
  0x9b   : > { %1200 = vmatprep.subr.mxu1 %v1410_v4 }
  0x9c   : > { %1201 = vmatpush3.msra.mxu1 %v1514_v11  ;;  %v287_v0 = vand.u32 4294901760, %v286_v62 }
  0x9d   : > { %1202 = vmatprep.subr.mxu1 %v1410_v4 }
  0x9e   : > { %1203 = vmatpush3.msra.mxu1 %v1517_v12  ;;  %1122 = vmatmul.mubr.f32.vlgmr.msra.gmra.mxu0 %v287_v0 }
  0x9f   : > { %1160 = vmatpush3.msra.mxu0 %v1528_v16  ;;  %1204 = vmatprep.subr.mxu1 %v1410_v4 }
  0xa0   : > { %1161 = vmatprep.subr.mxu0 %v1410_v4  ;;  %1205 = vmatpush3.msra.mxu1 %v1519_v13 }
  0xa1   : > { %1162 = vmatpush3.msra.mxu0 %v1531_v17  ;;  %1206 = vmatprep.subr.mxu1 %v1410_v4 }
  0xa2   : > { %1163 = vmatprep.subr.mxu0 %v1410_v4  ;;  %1207 = vmatpush3.msra.mxu1 %v1537_v19 }
  0xa3   : > { %1164 = vmatpush3.msra.mxu0 %v1534_v18  ;;  %1208 = vmatprep.subr.mxu1 %v1410_v4 }
  0xa4   : > { %1165 = vmatprep.subr.mxu0 %v1410_v4  ;;  %1209 = vmatpush3.msra.mxu1 %v1550_v23 }
  0xa5   : > { %1166 = vmatpush3.msra.mxu0 %v1541_v20  ;;  %1210 = vmatprep.subr.mxu1 %v1410_v4 }
  0xa6   : > { %1167 = vmatprep.subr.mxu0 %v1410_v4  ;;  %1211 = vmatpush3.msra.mxu1 %v1606_v46 }
  0xa7   : > { %1168 = vmatpush3.msra.mxu0 %v1544_v21  ;;  %1212 = vmatprep.subr.mxu1 %v1410_v4 }
  0xa8   : > { %1169 = vmatprep.subr.mxu0 %v1410_v4  ;;  %1213 = vmatpush3.msra.mxu1 %v1609_v47 }
  0xa9   : > { %1170 = vmatpush3.msra.mxu0 %v1548_v22  ;;  %1214 = vmatprep.subr.mxu1 %v1410_v4 }
  0xaa   : > { %1171 = vmatprep.subr.mxu0 %v1410_v4  ;;  %1215 = vmatpush3.msra.mxu1 %v1611_v48 }
  0xab   : > { %1172 = vmatpush3.msra.mxu0 %v1567_v30  ;;  %1216 = vmatprep.subr.mxu1 %v1410_v4 }
  0xac   : > { %1173 = vmatprep.subr.mxu0 %v1410_v4  ;;  %1217 = vmatpush3.msra.mxu1 %v1629_v55 }
  0xad   : > { %1174 = vmatpush3.msra.mxu0 %v1583_v35  ;;  %1218 = vmatprep.subr.mxu1 %v1410_v4 }
  0xae   : > { %1175 = vmatprep.subr.mxu0 %v1410_v4  ;;  %1219 = vmatpush3.msra.mxu1 %v1644_v61 }
  0xaf   : > { %1176 = vmatpush3.msra.mxu0 %v1623_v53  ;;  %1220 = vmatprep.subr.mxu1 %v1410_v4 }
  0xb0   : > { %1177 = vmatprep.subr.mxu0 %v1410_v4  ;;  %1221 = vmatpush3.msra.mxu1 %v1659_v3 }
  0xb1   : > { %1178 = vmatpush3.msra.mxu0 %v1626_v54  ;;  %1222 = vmatprep.subr.mxu1 %v1410_v4 }
  0xb2   : > { %1179 = vmatprep.subr.mxu0 %v1410_v4  ;;  %1223 = vmatpush3.msra.mxu1 %v1663_v8 }
  0xb3   : > { %1180 = vmatpush3.msra.mxu0 %v1641_v60  ;;  %1224 = vmatprep.subr.mxu1 %v1410_v4 }
  0xb4   : > { %1181 = vmatprep.subr.mxu0 %v1410_v4  ;;  %1225 = vmatpush3.msra.mxu1 %v1686_v38 }
  0xb5   : > { %1182 = vmatpush3.msra.mxu0 %v1656_v2  ;;  %1227 = vmatmul.mubr.f32.vlgmr.msra.gmra.mxu1 %v285_v58 }
  0xb6   : > { %1264 = vmatprep.subr.mxu1 %v1410_v4  ;;  %1183 = vmatprep.subr.mxu0 %v1410_v4 }
  0xb7   : > { %1265 = vmatpush3.msra.mxu1 %v1494_v5  ;;  %1184 = vmatpush3.msra.mxu0 %v1673_v31 }
  0xb8   : > { %1266 = vmatprep.subr.mxu1 %v1410_v4  ;;  %1185 = vmatprep.subr.mxu0 %v1410_v4 }
  0xb9   : > { %1267 = vmatpush3.msra.mxu1 %v1496_v6  ;;  %1186 = vmatpush3.msra.mxu0 %v1683_v37 }
  0xba   : > { %1268 = vmatprep.subr.mxu1 %v1410_v4  ;;  %1187 = vmatprep.subr.mxu0 %v1410_v4 }
  0xbb   : > { %1269 = vmatpush3.msra.mxu1 %v1498_v7  ;;  %1188 = vmatpush3.msra.mxu0 %v1691_v39 }
  0xbc   : > { %1270 = vmatprep.subr.mxu1 %v1410_v4  ;;  %1189 = vmatprep.subr.mxu0 %v1410_v4 }
  0xbd   : > { %1271 = vmatpush3.msra.mxu1 %v1514_v11  ;;  %1190 = vmatpush3.msra.mxu0 %v1705_v51 }
  0xbe   : > { %1191 = vmatprep.mubr.msk.f32.mxu0 %vm1411_vm0, %v1410_v4  ;;  %1272 = vmatprep.subr.mxu1 %v1410_v4 }
  0xbf   : > { %1192 = vmatmul.mubr.f32.vlgmr.msra.gmra.mxu0 %v1759_v27  ;;  %1229 = vmatprep.subr.mxu0 %v1410_v4 }
  0xc0   : > { %1273 = vmatpush3.msra.mxu1 %v1517_v12  ;;  %1230 = vmatpush3.msra.mxu0 %v296_v24  ;;  %v981_v24 = vsel %vm844_vm3, 1.0, %v1410_v4 }
  0xc1   : > { %1274 = vmatprep.subr.mxu1 %v1410_v4  ;;  %1231 = vmatprep.subr.mxu0 %v1410_v4 }
  0xc2   : > { %1275 = vmatpush3.msra.mxu1 %v1519_v13  ;;  %1232 = vmatpush3.msra.mxu0 %v303_v25 }
  0xc3   : > { %1276 = vmatprep.subr.mxu1 %v1410_v4  ;;  %1233 = vmatprep.subr.mxu0 %v1410_v4 }
  0xc4   : > { %1277 = vmatpush3.msra.mxu1 %v1537_v19  ;;  %1234 = vmatpush3.msra.mxu0 %v310_v26  ;;  %v849_v19 = vpop.permute.xlu0 %848 }
  0xc5   : > { %1278 = vmatprep.subr.mxu1 %v1410_v4  ;;  %1235 = vmatprep.subr.mxu0 %v1410_v4  ;;  %vm850_vm2 = vcmp.eq.s32.totalorder %v1745_v44, %v849_v19 }
  0xc6   : > { %1279 = vmatpush3.msra.mxu1 %v1550_v23  ;;  %1236 = vmatpush3.msra.mxu0 %v317_v28  ;;  %v982_v23 = vsel %vm850_vm2, 1.0, %v1410_v4 }
  0xc7   : > { %1280 = vmatprep.subr.mxu1 %v1410_v4  ;;  %1237 = vmatprep.subr.mxu0 %v1410_v4 }
  0xc8   : > { %1281 = vmatpush3.msra.mxu1 %v1606_v46  ;;  %1238 = vmatpush3.msra.mxu0 %v324_v29  ;;  %v853_v29 = vsub.f32 %v981_v24, %v982_v23 }
  0xc9   : > { %1282 = vmatprep.subr.mxu1 %v1410_v4  ;;  %1239 = vmatprep.subr.mxu0 %v1410_v4 }
  0xca   : > { %1283 = vmatpush3.msra.mxu1 %v1609_v47  ;;  %1240 = vmatpush3.msra.mxu0 %v331_v34 }
  0xcb   : > { %1284 = vmatprep.subr.mxu1 %v1410_v4  ;;  %1241 = vmatprep.subr.mxu0 %v1410_v4 }
  0xcc   : > { %1285 = vmatpush3.msra.mxu1 %v1611_v48  ;;  %1242 = vmatpush3.msra.mxu0 %v338_v43 }
  0xcd   : > { %1286 = vmatprep.subr.mxu1 %v1410_v4  ;;  %1243 = vmatprep.subr.mxu0 %v1410_v4 }
  0xce   : > { %1287 = vmatpush3.msra.mxu1 %v1629_v55  ;;  %1244 = vmatpush3.msra.mxu0 %v345_v50 }
  0xcf   : > { %1288 = vmatprep.subr.mxu1 %v1410_v4  ;;  %1245 = vmatprep.subr.mxu0 %v1410_v4 }
  0xd0   : > { %1289 = vmatpush3.msra.mxu1 %v1644_v61  ;;  %1246 = vmatpush3.msra.mxu0 %v352_v59 }
  0xd1   : > { %1290 = vmatprep.subr.mxu1 %v1410_v4  ;;  %1247 = vmatprep.subr.mxu0 %v1410_v4 }
  0xd2   : > { %1291 = vmatpush3.msra.mxu1 %v1659_v3  ;;  %1248 = vmatpush3.msra.mxu0 %v359_v1 }
  0xd3   : > { %1292 = vmatprep.subr.mxu1 %v1410_v4  ;;  %1249 = vmatprep.subr.mxu0 %v1410_v4 }
  0xd4   : > { %1293 = vmatpush3.msra.mxu1 %v1663_v8  ;;  %1250 = vmatpush3.msra.mxu0 %v366_v15 }
  0xd5   : > { %1294 = vmatprep.subr.mxu1 %v1410_v4  ;;  %1251 = vmatprep.subr.mxu0 %v1410_v4 }
  0xd6   : > { %1295 = vmatpush3.msra.mxu1 %v1686_v38  ;;  %1296 = vmatprep.mubr.msk.f32.mxu1 %vm1411_vm0, %v1410_v4 }
  0xd7   : > { %1252 = vmatpush3.msra.mxu0 %v373_v36  ;;  %1297 = vmatmul.mubr.msk.f32.vlgmr.msra.gmra.mxu1 %vm183_vm1, %v1413_v56 }
  0xd8   : > { %1253 = vmatprep.subr.mxu0 %v1410_v4  ;;  %1261 = vmatprep.mubr.msk.f32.mxu0 %vm1411_vm0, %v1410_v4 }
  0xd9   : > { %1254 = vmatpush3.msra.mxu0 %v380_v42 }
  0xda   : > { %1255 = vmatprep.subr.mxu0 %v1410_v4 }
  0xdb   : > { %1256 = vmatpush3.msra.mxu0 %v387_v49 }
  0xdc   : > { %1257 = vmatprep.subr.mxu0 %v1410_v4 }
  0xdd   : > { %1258 = vmatpush3.msra.mxu0 %v394_v57 }
  0xde   : > { %1259 = vmatprep.subr.mxu0 %v1410_v4 }
  0xdf   : > { %1260 = vmatpush3.msra.mxu0 %v401_v63 }
  0xe0   : > { %1262 = vmatmul.mubr.msk.f32.vlgmr.msra.gmra.mxu0 %vm183_vm1, %v1413_v56 }
 0x155   : > { %v440_v5 = vpop.f32.mrf.mxu1 }
 0x157   : > { %v1158_v6 = vpop.f32.mrf.mxu1 }
 0x15e   : > { %v289_v7 = vpop.f32.mrf.mxu0 }
 0x15f   : > { %v441_v20 = vadd.f32 %v440_v5, %v289_v7 }
 0x160   : > { %v1123_v11 = vpop.f32.mrf.mxu0 }
 0x175   : > { %v633_v12 = vpop.f32.mrf.mxu1 }
 0x177   : > { %v1228_v13 = vpop.f32.mrf.mxu1 }
 0x17f   : > { %v544_v16 = vpop.f32.mrf.mxu0 }
 0x180   : > { %v545_v22 = vadd.f32 %v544_v16, %v441_v20 }
 0x181   : > { %v1193_v17 = vpop.f32.mrf.mxu0 }
 0x182   : > { %v634_v25 = vadd.f32 %v633_v12, %v545_v22 }
 0x197   : > { %v839_v18 = vpop.f32.mrf.mxu1 }
 0x199   : > { %v1298_v21 = vpop.f32.mrf.mxu1 }
 0x1a0   : > { %v752_v26 = vpop.f32.mrf.mxu0 }
 0x1a1   : > { %v753_v28 = vadd.f32 %v752_v26, %v634_v25 }
 0x1a2   : > { %v1263_v30 = vpop.f32.mrf.mxu0 }
 0x1a3   : > { %v840_v34 = vadd.f32 %v839_v18, %v753_v28 }
 0x1a5   : > { %v854_v35 = vmul.f32 %v853_v29, %v840_v34  ;;  %843 = vst [vmem:[%s162_s29] sm:$0xff] %v840_v34 }
 0x1a7   : > { %855 = vadd.xlane.f32.xlu1 %v854_v35 }
 0x1a8   : > { %1360 = shalt.err (!%p1357_p3)
}
 0x1a9   : > { %s1361_s16 = scalar_lea.hbm %s882_s7, 128  ;;  %s1365_s26 = scalar_lea.hbm %s1967_s2, 256 }
 0x1aa   : > { %p1362_p4 = scmp.ne.s32.totalorder %s882_s7, %s1361_s16  ;;  %p1366_p9 = scmp.lt.s32.totalorder %s882_s7, %s1967_s2 }
 0x1ab   : > { %p1367_p10 = scmp.lt.s32.totalorder %s1365_s26, %s1361_s16 }
 0x1ac   : > { %p1363_p7 = pnand %p1362_p4, %p1473_p5 }
 0x1ad   : > { %p1368_p11 = por %p1367_p10, %p1366_p9 }
 0x1ae   : > { %p1364_p8 = pneg %p1363_p7 }
 0x1b0   : > { %p1369_p12 = pnand %p1368_p11, %p1364_p8 }
 0x1b2   : > { %1372 = shalt.err (!%p1369_p12)
}
 0x1b3   : > { %1301 = dma.vmem_to_hbm [thread:$0]  (%p1473_p5), %s885_s4, 128, %s882_s7, %s867_s8  }
 0x1b4   : > { %s176_s5 = scalar_lea.vmem %s1968_s3, %s975_s20 }
 0x230   : > { %v856_v4 = vpop.xlane.xlu1 %855 }
 0x231   : > { %v857_v43 = vrot.slane %v856_v4, 4 }
 0x233   : > { %v858_v46 = vadd.f32 %v857_v43, %v856_v4 }
 0x235   : > { %v859_v47 = vrot.slane %v858_v46, 2 }
 0x237   : > { %v860_v48 = vadd.f32 %v859_v47, %v858_v46 }
 0x239   : > { %v861_v50 = vrot.slane %v860_v48, 1 }
 0x23b   : > { %v862_v53 = vadd.f32 %v861_v50, %v860_v48 }
 0x23d   : > { %1299 = vpush %v862_v53 }
 0x26e   : > { %s1300_s6 = spop %1299 }
 0x26f   : > { %v864_v54 = vstv %s1300_s6 }
 0x270   : > { %865 = vst [vmem:[%s176_s5] sm:$0xff] %v864_v54 }
 0x271 PF: > { %p1307_p5 = scmp.ge.s32.totalorder %s1407_s15, 2  ;;  %s899_s22 = sand.u32 1, %s1395_s12  }
 0x272   : > { %s900_s4 = scalar_lea.sflag [#allocation3], %s899_s22 }
 0x273   : > { %p1304_p13 = pnand %p1307_p5, %p1477_p6 }
 0x275   : > { %p1305_p0 = pneg %p1304_p13 }
 0x277   : > { %1390 = dma.done.wait (%p1305_p0), %s900_s4, 128  }
 0x278   : > { %1392 = vsyncadd (%p1305_p0), %s900_s4, 4294967168  ;;  %p14_p1 = scmp.ge.s32.totalorder %s1460_s18, 4   ;;  %s1971_s12 = smov %s1399_s13 }
 0x279   : > { %s1972_s13 = smov %s1403_s14  ;;  %s1973_s14 = smov %s1471_s21 }
 0x27a   : > { %s1974_s15 = smov %s1460_s18  ;;  %16 = sbr.rel (!%p14_p1) target bundleno = 3 (0x3), region = 75 }
 0x27f   :  { %912 = vsyncpa [#allocation3], 1 }
 0x280   :  { %914 = vsyncpa [#allocation3 + $0x1], 1 }

</bundles_post_ra>
